<compile_context>
chip_gen: v5e
topology: v5e:2x2
jax: 0.10.0
libtpu: 0.0.40
codegen_flags: <defaults>
</compile_context>

<pallas_src>
import functools

import jax
import jax.numpy as jnp
from jax.experimental import pallas as pl
from jax.experimental.pallas import tpu as pltpu

D_IN = 28 * 28     # 784
D_ENC = 3          # bottleneck width
ENC_PAD = 128      # lane-padded bottleneck width used for the encoded output


def _round_up(n, m):
    return ((n + m - 1) // m) * m


# ----------------------------------------------------------------------------
# One-time, host-side configuration probes (no kernel invocation involved).
# ----------------------------------------------------------------------------
def _detect_chip():
    try:
        kind = jax.devices()[0].device_kind.lower()
    except Exception:          # device query only; never wraps the kernel
        return "unknown"
    if "v7" in kind:
        return "v7x"
    if "v6" in kind:
        return "v6e"
    if "v5" in kind:
        return "v5e"
    return "unknown"


_CHIP = _detect_chip()

# chip -> (default tile_b, vmem_limit_bytes, use bf16 EUP path for sigmoid)
_CHIP_CONFIG = {
    "v5e":     (512,  32 * 1024 * 1024, False),   # no bf16 EUP/VALU on v5e
    "v6e":     (1024, 64 * 1024 * 1024, True),
    "v7x":     (1024, 44 * 1024 * 1024, True),    # 64 MiB physical per TC
    "unknown": (512,  32 * 1024 * 1024, False),
}


def _probe_single_buffer():
    # Capability probe for per-operand buffer counts: only constructs a
    # BlockSpec, never compiles or runs a kernel.
    try:
        pl.BlockSpec((8, 128), lambda i: (0, 0), pipeline_mode=pl.Buffered(1))
        return True
    except Exception:
        return False


_SINGLE_BUFFER_WEIGHTS = _probe_single_buffer()


# ----------------------------------------------------------------------------
# Kernel
# ----------------------------------------------------------------------------
def _autoencoder_kernel(
    x_ref,
    # encoder params (W already transposed to (in, out) bf16; biases (1, out) f32)
    w1_ref, b1_ref, w2_ref, b2_ref, w3_ref, b3_ref, w4_ref, b4_ref,
    # decoder params
    w5_ref, b5_ref, w6_ref, b6_ref, w7_ref, b7_ref, w8_ref, b8_ref,
    # outputs
    enc_ref, dec_ref,
    *, bf16_sigmoid,
):
    def linear(h, w_ref, b_ref):
        # bf16 x bf16 matmul on the MXU, f32 accumulation, f32 bias add.
        return (
            jnp.dot(h.astype(jnp.bfloat16), w_ref[...],
                    preferred_element_type=jnp.float32)
            + b_ref[...]
        )

    relu = lambda h: jnp.maximum(h, 0.0)

    x = x_ref[...]                                    # (TB, 784) f32 or bf16

    # Encoder.
    h = relu(linear(x, w1_ref, b1_ref))               # (TB, 128)
    h = relu(linear(h, w2_ref, b2_ref))               # (TB, 64)
    h = relu(linear(h, w3_ref, b3_ref))               # (TB, 12)
    enc_pad = linear(h, w4_ref, b4_ref)               # (TB, 128); cols 3: == 0

    # Decoder (w5 rows 3: are zero, so the padded lanes contribute nothing).
    h = relu(linear(enc_pad, w5_ref, b5_ref))         # (TB, 12)
    h = relu(linear(h, w6_ref, b6_ref))               # (TB, 64)
    h = relu(linear(h, w7_ref, b7_ref))               # (TB, 128)
    z = linear(h, w8_ref, b8_ref)                     # (TB, 784) pre-sigmoid, f32

    # sigmoid(z) == 0.5 * tanh(0.5 * z) + 0.5  -> one EUP op instead of exp+div.
    if bf16_sigmoid:
        t = jnp.tanh((z * 0.5).astype(jnp.bfloat16))  # bf16 EUP path (v6e/v7x)
        dec = t.astype(jnp.float32) * 0.5 + 0.5
    else:
        dec = jnp.tanh(z * 0.5) * 0.5 + 0.5           # f32 path (v5e)

    enc_ref[...] = enc_pad.astype(enc_ref.dtype)
    dec_ref[...] = dec.astype(dec_ref.dtype)


# ----------------------------------------------------------------------------
# Parameter preparation (one-time; not paid per forward call)
# ----------------------------------------------------------------------------
def prepare_params(params):
    """Convert PyTorch-layout params [(W(out,in), b(out,)), ...] into kernel
    layout: W -> (in, out) bf16, b -> (1, out) f32. The bottleneck layer
    (idx 3) is zero-padded to ENC_PAD output lanes and the first decoder layer
    (idx 4) to ENC_PAD input rows (numerically exact — padded lanes are zero
    and hit zero weight rows). Returns a flat tuple (w1, b1, ..., w8, b8)."""
    assert len(params) == 8
    flat = []
    for idx, (w, b) in enumerate(params):
        w = jnp.asarray(w, jnp.float32).T              # (in, out)
        b = jnp.asarray(b, jnp.float32).reshape(1, -1)
        if idx == 3:   # 12 -> 3 bottleneck: pad out dim 3 -> ENC_PAD
            w = jnp.pad(w, ((0, 0), (0, ENC_PAD - D_ENC)))
            b = jnp.pad(b, ((0, 0), (0, ENC_PAD - D_ENC)))
        if idx == 4:   # 3 -> 12: pad in dim 3 -> ENC_PAD with zero rows
            w = jnp.pad(w, ((0, ENC_PAD - D_ENC), (0, 0)))
        flat.append(w.astype(jnp.bfloat16))            # weights in bf16
        flat.append(b)                                 # biases stay f32
    return tuple(flat)


# ----------------------------------------------------------------------------
# Forward builder (cached per shape/config) + wrapper
# ----------------------------------------------------------------------------
@functools.lru_cache(maxsize=None)
def _build_forward(batch, b_pad, tile_b, x_dtype_name, out_dtype_name,
                   param_shapes, single_buffer_weights, bf16_sigmoid,
                   vmem_limit_bytes):
    x_dtype = jnp.dtype(x_dtype_name)
    out_dtype = jnp.dtype(out_dtype_name)
    grid = (b_pad // tile_b,)

    if single_buffer_weights:
        def const_spec(shape):
            # Constant index_map: parameters never change across grid steps,
            # so a single VMEM buffer suffices (saves VMEM + DMA bookkeeping).
            return pl.BlockSpec(shape, lambda i: (0, 0),
                                pipeline_mode=pl.Buffered(1))
    else:
        def const_spec(shape):
            return pl.BlockSpec(shape, lambda i: (0, 0))

    in_specs = [pl.BlockSpec((tile_b, D_IN), lambda i: (i, 0))]
    in_specs += [const_spec(s) for s in param_shapes]

    out_specs = [
        pl.BlockSpec((tile_b, ENC_PAD), lambda i: (i, 0)),  # lane-dense encoded
        pl.BlockSpec((tile_b, D_IN), lambda i: (i, 0)),     # decoded
    ]
    out_shape = (
        jax.ShapeDtypeStruct((b_pad, ENC_PAD), out_dtype),
        jax.ShapeDtypeStruct((b_pad, D_IN), out_dtype),
    )

    fwd = pl.pallas_call(
        functools.partial(_autoencoder_kernel, bf16_sigmoid=bf16_sigmoid),
        out_shape=out_shape,
        grid_spec=pltpu.PrefetchScalarGridSpec(
            num_scalar_prefetch=0,
            grid=grid,
            in_specs=in_specs,
            out_specs=out_specs,
        ),
        compiler_params=pltpu.CompilerParams(
            dimension_semantics=("parallel",),
            vmem_limit_bytes=vmem_limit_bytes,
        ),
    )

    def run(x, *params):
        x = x.astype(x_dtype)
        if b_pad != batch:
            x = jnp.pad(x, ((0, b_pad - batch), (0, 0)))
        enc_pad, dec = fwd(x, *params)
        # Slices fuse into the jitted program: no eager post-kernel HBM copy.
        return enc_pad[:batch, :D_ENC], dec[:batch]

    return jax.jit(run)


def autoencoder_forward(x, prepared_params, *, tile_b=None,
                        out_dtype=jnp.float32):
    """x: (B, 784) f32 or bf16. prepared_params: output of prepare_params().
    Returns (encoded (B, 3), decoded (B, 784)) in out_dtype."""
    B, D = x.shape
    assert D == D_IN

    cfg_tile, vmem_limit, bf16_sigmoid = _CHIP_CONFIG[_CHIP]
    if tile_b is None:
        tile_b = cfg_tile

    # Accept bf16 input directly (halves the dominant HBM stream); otherwise f32.
    x_dtype = jnp.bfloat16 if x.dtype == jnp.bfloat16 else jnp.float32

    # Batch tile: as large as configured, but never larger than the batch
    # itself (rounded to 16 rows for dtype-agnostic sublane alignment).
    tile = min(_round_up(tile_b, 16), _round_up(B, 16))
    if _CHIP == "v7x" and B > 256:
        # Ensure the ("parallel",) axis has >= 2 steps so both TCs get work.
        tile = min(tile, _round_up((B + 1) // 2, 256))
    b_pad = _round_up(B, tile)

    param_shapes = tuple(p.shape for p in prepared_params)
    fn = _build_forward(B, b_pad, tile,
                        jnp.dtype(x_dtype).name, jnp.dtype(out_dtype).name,
                        param_shapes, _SINGLE_BUFFER_WEIGHTS, bf16_sigmoid,
                        vmem_limit)
    return fn(x, *prepared_params)


# ----------------------------------------------------------------------------
# Deterministic init + pure-JAX reference
# ----------------------------------------------------------------------------
def init_params(key):
    """Deterministic init matching the nn.Linear shapes in the module.
    Returns list of (W, b) in PyTorch layout: W=(out, in), b=(out,)."""
    dims = [
        (28 * 28, 128), (128, 64), (64, 12), (12, 3),       # encoder
        (3, 12), (12, 64), (64, 128), (128, 28 * 28),       # decoder
    ]
    params = []
    for (fan_in, fan_out) in dims:
        key, kw, kb = jax.random.split(key, 3)
        bound = 1.0 / jnp.sqrt(fan_in)
        w = jax.random.uniform(kw, (fan_out, fan_in), jnp.float32, -bound, bound)
        b = jax.random.uniform(kb, (fan_out,), jnp.float32, -bound, bound)
        params.append((w, b))
    return params


def reference_forward(x, params):
    """Pure-JAX f32 reference of the PyTorch forward pass."""
    def linear(h, wb):
        w, b = wb
        return h @ w.T + b

    h = x
    for i in range(3):
        h = jax.nn.relu(linear(h, params[i]))
    encoded = linear(h, params[3])
    h = encoded
    for i in range(4, 7):
        h = jax.nn.relu(linear(h, params[i]))
    decoded = jax.nn.sigmoid(linear(h, params[7]))
    return encoded, decoded


if __name__ == "__main__":
    key = jax.random.PRNGKey(0)
    kx, kp = jax.random.split(key)

    B = 16
    x = jax.random.uniform(kx, (B, 28 * 28), jnp.float32)  # "pixels" in [0,1)
    params = init_params(kp)
    prepared = prepare_params(params)                 # one-time layout prep

    enc_ref, dec_ref = reference_forward(x, params)

    # Default path: f32 I/O (matches the PyTorch module's output dtype).
    enc, dec = autoencoder_forward(x, prepared)
    enc = jax.block_until_ready(enc)
    dec = jax.block_until_ready(dec)
    assert enc.shape == (B, 3) and dec.shape == (B, 28 * 28)
    # bf16 matmuls (f32 accumulation) + tanh-form sigmoid -> loosened tolerance.
    assert jnp.allclose(enc, enc_ref, atol=2e-2, rtol=2e-2)
    assert jnp.allclose(dec, dec_ref, atol=2e-2, rtol=2e-2)

    # Reduced-HBM-traffic path: bf16 input accepted directly, bf16 outputs.
    enc16, dec16 = autoencoder_forward(x.astype(jnp.bfloat16), prepared,
                                       out_dtype=jnp.bfloat16)
    enc16 = jax.block_until_ready(enc16)
    dec16 = jax.block_until_ready(dec16)
    assert enc16.dtype == jnp.bfloat16 and dec16.dtype == jnp.bfloat16
    assert jnp.allclose(enc16.astype(jnp.float32), enc_ref, atol=3e-2, rtol=3e-2)
    assert jnp.allclose(dec16.astype(jnp.float32), dec_ref, atol=3e-2, rtol=3e-2)

    print("KERNEL_OK")
</pallas_src>

<mosaic_0001>
module attributes {stable_mosaic.version = 11 : i64} {
  func.func @_autoencoder_kernel(%arg0: i32, %arg1: memref<16x784xf32, #tpu.memory_space<vmem>>, %arg2: memref<784x128xbf16, #tpu.memory_space<vmem>>, %arg3: memref<1x128xf32, #tpu.memory_space<vmem>>, %arg4: memref<128x64xbf16, #tpu.memory_space<vmem>>, %arg5: memref<1x64xf32, #tpu.memory_space<vmem>>, %arg6: memref<64x12xbf16, #tpu.memory_space<vmem>>, %arg7: memref<1x12xf32, #tpu.memory_space<vmem>>, %arg8: memref<12x128xbf16, #tpu.memory_space<vmem>>, %arg9: memref<1x128xf32, #tpu.memory_space<vmem>>, %arg10: memref<128x12xbf16, #tpu.memory_space<vmem>>, %arg11: memref<1x12xf32, #tpu.memory_space<vmem>>, %arg12: memref<12x64xbf16, #tpu.memory_space<vmem>>, %arg13: memref<1x64xf32, #tpu.memory_space<vmem>>, %arg14: memref<64x128xbf16, #tpu.memory_space<vmem>>, %arg15: memref<1x128xf32, #tpu.memory_space<vmem>>, %arg16: memref<128x784xbf16, #tpu.memory_space<vmem>>, %arg17: memref<1x784xf32, #tpu.memory_space<vmem>>, %arg18: memref<16x128xf32, #tpu.memory_space<vmem>>, %arg19: memref<16x784xf32, #tpu.memory_space<vmem>>) attributes {dimension_semantics = [#tpu.dimension_semantics<parallel>], iteration_bounds = array<i64: 1>, scalar_prefetch = 0 : i64, scratch_operands = 0 : i64, tpu.core_type = #tpu.core_type<tc>, window_params = [{transform_indices = @transform_0, window_bounds = array<i64: 16, 784>}, {pipeline_mode = #tpu.pipeline_mode<synchronous>, transform_indices = @transform_1, window_bounds = array<i64: 784, 128>}, {pipeline_mode = #tpu.pipeline_mode<synchronous>, transform_indices = @transform_2, window_bounds = array<i64: 1, 128>}, {pipeline_mode = #tpu.pipeline_mode<synchronous>, transform_indices = @transform_3, window_bounds = array<i64: 128, 64>}, {pipeline_mode = #tpu.pipeline_mode<synchronous>, transform_indices = @transform_4, window_bounds = array<i64: 1, 64>}, {pipeline_mode = #tpu.pipeline_mode<synchronous>, transform_indices = @transform_5, window_bounds = array<i64: 64, 12>}, {pipeline_mode = #tpu.pipeline_mode<synchronous>, transform_indices = @transform_6, window_bounds = array<i64: 1, 12>}, {pipeline_mode = #tpu.pipeline_mode<synchronous>, transform_indices = @transform_7, window_bounds = array<i64: 12, 128>}, {pipeline_mode = #tpu.pipeline_mode<synchronous>, transform_indices = @transform_8, window_bounds = array<i64: 1, 128>}, {pipeline_mode = #tpu.pipeline_mode<synchronous>, transform_indices = @transform_9, window_bounds = array<i64: 128, 12>}, {pipeline_mode = #tpu.pipeline_mode<synchronous>, transform_indices = @transform_10, window_bounds = array<i64: 1, 12>}, {pipeline_mode = #tpu.pipeline_mode<synchronous>, transform_indices = @transform_11, window_bounds = array<i64: 12, 64>}, {pipeline_mode = #tpu.pipeline_mode<synchronous>, transform_indices = @transform_12, window_bounds = array<i64: 1, 64>}, {pipeline_mode = #tpu.pipeline_mode<synchronous>, transform_indices = @transform_13, window_bounds = array<i64: 64, 128>}, {pipeline_mode = #tpu.pipeline_mode<synchronous>, transform_indices = @transform_14, window_bounds = array<i64: 1, 128>}, {pipeline_mode = #tpu.pipeline_mode<synchronous>, transform_indices = @transform_15, window_bounds = array<i64: 128, 784>}, {pipeline_mode = #tpu.pipeline_mode<synchronous>, transform_indices = @transform_16, window_bounds = array<i64: 1, 784>}, {transform_indices = @transform_17, window_bounds = array<i64: 16, 128>}, {transform_indices = @transform_18, window_bounds = array<i64: 16, 784>}]} {
    %c0 = arith.constant 0 : index
    %c0_0 = arith.constant 0 : index
    %0 = vector.load %arg1[%c0, %c0_0] : memref<16x784xf32, #tpu.memory_space<vmem>>, vector<16x784xf32>
    %1 = arith.truncf %0 : vector<16x784xf32> to vector<16x784xbf16>
    %c0_1 = arith.constant 0 : index
    %c0_2 = arith.constant 0 : index
    %2 = vector.load %arg2[%c0_1, %c0_2] : memref<784x128xbf16, #tpu.memory_space<vmem>>, vector<784x128xbf16>
    %cst = arith.constant dense<0.000000e+00> : vector<16x128xf32>
    %3 = tpu.matmul %1, %2, %cst {dimension_numbers = #tpu.dot_dimension_numbers<[1], [0], [0], [1], [0, 0, 1, 1], [], []>} : vector<16x784xbf16>, vector<784x128xbf16>, vector<16x128xf32> -> vector<16x128xf32>
    %c0_3 = arith.constant 0 : index
    %c0_4 = arith.constant 0 : index
    %4 = vector.load %arg3[%c0_3, %c0_4] : memref<1x128xf32, #tpu.memory_space<vmem>>, vector<1x128xf32>
    %5 = vector.broadcast %4 : vector<1x128xf32> to vector<16x128xf32>
    %6 = arith.addf %3, %5 : vector<16x128xf32>
    %cst_5 = arith.constant 0.000000e+00 : f32
    %7 = vector.broadcast %cst_5 : f32 to vector<16x128xf32>
    %8 = arith.maximumf %6, %7 : vector<16x128xf32>
    %9 = arith.truncf %8 : vector<16x128xf32> to vector<16x128xbf16>
    %c0_6 = arith.constant 0 : index
    %c0_7 = arith.constant 0 : index
    %10 = vector.load %arg4[%c0_6, %c0_7] : memref<128x64xbf16, #tpu.memory_space<vmem>>, vector<128x64xbf16>
    %cst_8 = arith.constant dense<0.000000e+00> : vector<16x64xf32>
    %11 = tpu.matmul %9, %10, %cst_8 {dimension_numbers = #tpu.dot_dimension_numbers<[1], [0], [0], [1], [0, 0, 1, 1], [], []>} : vector<16x128xbf16>, vector<128x64xbf16>, vector<16x64xf32> -> vector<16x64xf32>
    %c0_9 = arith.constant 0 : index
    %c0_10 = arith.constant 0 : index
    %12 = vector.load %arg5[%c0_9, %c0_10] : memref<1x64xf32, #tpu.memory_space<vmem>>, vector<1x64xf32>
    %13 = vector.broadcast %12 : vector<1x64xf32> to vector<16x64xf32>
    %14 = arith.addf %11, %13 : vector<16x64xf32>
    %cst_11 = arith.constant 0.000000e+00 : f32
    %15 = vector.broadcast %cst_11 : f32 to vector<16x64xf32>
    %16 = arith.maximumf %14, %15 : vector<16x64xf32>
    %17 = arith.truncf %16 : vector<16x64xf32> to vector<16x64xbf16>
    %c0_12 = arith.constant 0 : index
    %c0_13 = arith.constant 0 : index
    %18 = vector.load %arg6[%c0_12, %c0_13] : memref<64x12xbf16, #tpu.memory_space<vmem>>, vector<64x12xbf16>
    %cst_14 = arith.constant dense<0.000000e+00> : vector<16x12xf32>
    %19 = tpu.matmul %17, %18, %cst_14 {dimension_numbers = #tpu.dot_dimension_numbers<[1], [0], [0], [1], [0, 0, 1, 1], [], []>} : vector<16x64xbf16>, vector<64x12xbf16>, vector<16x12xf32> -> vector<16x12xf32>
    %c0_15 = arith.constant 0 : index
    %c0_16 = arith.constant 0 : index
    %20 = vector.load %arg7[%c0_15, %c0_16] : memref<1x12xf32, #tpu.memory_space<vmem>>, vector<1x12xf32>
    %21 = vector.broadcast %20 : vector<1x12xf32> to vector<16x12xf32>
    %22 = arith.addf %19, %21 : vector<16x12xf32>
    %cst_17 = arith.constant 0.000000e+00 : f32
    %23 = vector.broadcast %cst_17 : f32 to vector<16x12xf32>
    %24 = arith.maximumf %22, %23 : vector<16x12xf32>
    %25 = arith.truncf %24 : vector<16x12xf32> to vector<16x12xbf16>
    %c0_18 = arith.constant 0 : index
    %c0_19 = arith.constant 0 : index
    %26 = vector.load %arg8[%c0_18, %c0_19] : memref<12x128xbf16, #tpu.memory_space<vmem>>, vector<12x128xbf16>
    %cst_20 = arith.constant dense<0.000000e+00> : vector<16x128xf32>
    %27 = tpu.matmul %25, %26, %cst_20 {dimension_numbers = #tpu.dot_dimension_numbers<[1], [0], [0], [1], [0, 0, 1, 1], [], []>} : vector<16x12xbf16>, vector<12x128xbf16>, vector<16x128xf32> -> vector<16x128xf32>
    %c0_21 = arith.constant 0 : index
    %c0_22 = arith.constant 0 : index
    %28 = vector.load %arg9[%c0_21, %c0_22] : memref<1x128xf32, #tpu.memory_space<vmem>>, vector<1x128xf32>
    %29 = vector.broadcast %28 : vector<1x128xf32> to vector<16x128xf32>
    %30 = arith.addf %27, %29 : vector<16x128xf32>
    %31 = arith.truncf %30 : vector<16x128xf32> to vector<16x128xbf16>
    %c0_23 = arith.constant 0 : index
    %c0_24 = arith.constant 0 : index
    %32 = vector.load %arg10[%c0_23, %c0_24] : memref<128x12xbf16, #tpu.memory_space<vmem>>, vector<128x12xbf16>
    %cst_25 = arith.constant dense<0.000000e+00> : vector<16x12xf32>
    %33 = tpu.matmul %31, %32, %cst_25 {dimension_numbers = #tpu.dot_dimension_numbers<[1], [0], [0], [1], [0, 0, 1, 1], [], []>} : vector<16x128xbf16>, vector<128x12xbf16>, vector<16x12xf32> -> vector<16x12xf32>
    %c0_26 = arith.constant 0 : index
    %c0_27 = arith.constant 0 : index
    %34 = vector.load %arg11[%c0_26, %c0_27] : memref<1x12xf32, #tpu.memory_space<vmem>>, vector<1x12xf32>
    %35 = vector.broadcast %34 : vector<1x12xf32> to vector<16x12xf32>
    %36 = arith.addf %33, %35 : vector<16x12xf32>
    %cst_28 = arith.constant 0.000000e+00 : f32
    %37 = vector.broadcast %cst_28 : f32 to vector<16x12xf32>
    %38 = arith.maximumf %36, %37 : vector<16x12xf32>
    %39 = arith.truncf %38 : vector<16x12xf32> to vector<16x12xbf16>
    %c0_29 = arith.constant 0 : index
    %c0_30 = arith.constant 0 : index
    %40 = vector.load %arg12[%c0_29, %c0_30] : memref<12x64xbf16, #tpu.memory_space<vmem>>, vector<12x64xbf16>
    %cst_31 = arith.constant dense<0.000000e+00> : vector<16x64xf32>
    %41 = tpu.matmul %39, %40, %cst_31 {dimension_numbers = #tpu.dot_dimension_numbers<[1], [0], [0], [1], [0, 0, 1, 1], [], []>} : vector<16x12xbf16>, vector<12x64xbf16>, vector<16x64xf32> -> vector<16x64xf32>
    %c0_32 = arith.constant 0 : index
    %c0_33 = arith.constant 0 : index
    %42 = vector.load %arg13[%c0_32, %c0_33] : memref<1x64xf32, #tpu.memory_space<vmem>>, vector<1x64xf32>
    %43 = vector.broadcast %42 : vector<1x64xf32> to vector<16x64xf32>
    %44 = arith.addf %41, %43 : vector<16x64xf32>
    %cst_34 = arith.constant 0.000000e+00 : f32
    %45 = vector.broadcast %cst_34 : f32 to vector<16x64xf32>
    %46 = arith.maximumf %44, %45 : vector<16x64xf32>
    %47 = arith.truncf %46 : vector<16x64xf32> to vector<16x64xbf16>
    %c0_35 = arith.constant 0 : index
    %c0_36 = arith.constant 0 : index
    %48 = vector.load %arg14[%c0_35, %c0_36] : memref<64x128xbf16, #tpu.memory_space<vmem>>, vector<64x128xbf16>
    %cst_37 = arith.constant dense<0.000000e+00> : vector<16x128xf32>
    %49 = tpu.matmul %47, %48, %cst_37 {dimension_numbers = #tpu.dot_dimension_numbers<[1], [0], [0], [1], [0, 0, 1, 1], [], []>} : vector<16x64xbf16>, vector<64x128xbf16>, vector<16x128xf32> -> vector<16x128xf32>
    %c0_38 = arith.constant 0 : index
    %c0_39 = arith.constant 0 : index
    %50 = vector.load %arg15[%c0_38, %c0_39] : memref<1x128xf32, #tpu.memory_space<vmem>>, vector<1x128xf32>
    %51 = vector.broadcast %50 : vector<1x128xf32> to vector<16x128xf32>
    %52 = arith.addf %49, %51 : vector<16x128xf32>
    %cst_40 = arith.constant 0.000000e+00 : f32
    %53 = vector.broadcast %cst_40 : f32 to vector<16x128xf32>
    %54 = arith.maximumf %52, %53 : vector<16x128xf32>
    %55 = arith.truncf %54 : vector<16x128xf32> to vector<16x128xbf16>
    %c0_41 = arith.constant 0 : index
    %c0_42 = arith.constant 0 : index
    %56 = vector.load %arg16[%c0_41, %c0_42] : memref<128x784xbf16, #tpu.memory_space<vmem>>, vector<128x784xbf16>
    %cst_43 = arith.constant dense<0.000000e+00> : vector<16x784xf32>
    %57 = tpu.matmul %55, %56, %cst_43 {dimension_numbers = #tpu.dot_dimension_numbers<[1], [0], [0], [1], [0, 0, 1, 1], [], []>} : vector<16x128xbf16>, vector<128x784xbf16>, vector<16x784xf32> -> vector<16x784xf32>
    %c0_44 = arith.constant 0 : index
    %c0_45 = arith.constant 0 : index
    %58 = vector.load %arg17[%c0_44, %c0_45] : memref<1x784xf32, #tpu.memory_space<vmem>>, vector<1x784xf32>
    %59 = vector.broadcast %58 : vector<1x784xf32> to vector<16x784xf32>
    %60 = arith.addf %57, %59 : vector<16x784xf32>
    %cst_46 = arith.constant 5.000000e-01 : f32
    %61 = vector.broadcast %cst_46 : f32 to vector<16x784xf32>
    %62 = arith.mulf %60, %61 : vector<16x784xf32>
    %63 = math.tanh %62 : vector<16x784xf32>
    %cst_47 = arith.constant 5.000000e-01 : f32
    %64 = vector.broadcast %cst_47 : f32 to vector<16x784xf32>
    %65 = arith.mulf %63, %64 : vector<16x784xf32>
    %cst_48 = arith.constant 5.000000e-01 : f32
    %66 = vector.broadcast %cst_48 : f32 to vector<16x784xf32>
    %67 = arith.addf %65, %66 : vector<16x784xf32>
    %c0_49 = arith.constant 0 : index
    %c0_50 = arith.constant 0 : index
    %68 = vector.load %arg18[%c0_49, %c0_50] : memref<16x128xf32, #tpu.memory_space<vmem>>, vector<16x128xf32>
    tpu.vector_store %arg18[%c0_49, %c0_50], %30 {strides = array<i32>} : memref<16x128xf32, #tpu.memory_space<vmem>>, vector<16x128xf32>,
    %c0_51 = arith.constant 0 : index
    %c0_52 = arith.constant 0 : index
    %69 = vector.load %arg19[%c0_51, %c0_52] : memref<16x784xf32, #tpu.memory_space<vmem>>, vector<16x784xf32>
    tpu.vector_store %arg19[%c0_51, %c0_52], %67 {strides = array<i32>} : memref<16x784xf32, #tpu.memory_space<vmem>>, vector<16x784xf32>,
    return
  }
  func.func @transform_0(%arg0: i32) -> (i32, i32) {
    %c0_i32 = arith.constant 0 : i32
    %c0_i32_0 = arith.constant 0 : i32
    return %arg0, %c0_i32 : i32, i32
  }
  func.func @transform_1(%arg0: i32) -> (i32, i32) {
    %c0_i32 = arith.constant 0 : i32
    %c0_i32_0 = arith.constant 0 : i32
    %c0_i32_1 = arith.constant 0 : i32
    return %c0_i32, %c0_i32_0 : i32, i32
  }
  func.func @transform_2(%arg0: i32) -> (i32, i32) {
    %c0_i32 = arith.constant 0 : i32
    %c0_i32_0 = arith.constant 0 : i32
    %c0_i32_1 = arith.constant 0 : i32
    return %c0_i32, %c0_i32_0 : i32, i32
  }
  func.func @transform_3(%arg0: i32) -> (i32, i32) {
    %c0_i32 = arith.constant 0 : i32
    %c0_i32_0 = arith.constant 0 : i32
    %c0_i32_1 = arith.constant 0 : i32
    return %c0_i32, %c0_i32_0 : i32, i32
  }
  func.func @transform_4(%arg0: i32) -> (i32, i32) {
    %c0_i32 = arith.constant 0 : i32
    %c0_i32_0 = arith.constant 0 : i32
    %c0_i32_1 = arith.constant 0 : i32
    return %c0_i32, %c0_i32_0 : i32, i32
  }
  func.func @transform_5(%arg0: i32) -> (i32, i32) {
    %c0_i32 = arith.constant 0 : i32
    %c0_i32_0 = arith.constant 0 : i32
    %c0_i32_1 = arith.constant 0 : i32
    return %c0_i32, %c0_i32_0 : i32, i32
  }
  func.func @transform_6(%arg0: i32) -> (i32, i32) {
    %c0_i32 = arith.constant 0 : i32
    %c0_i32_0 = arith.constant 0 : i32
    %c0_i32_1 = arith.constant 0 : i32
    return %c0_i32, %c0_i32_0 : i32, i32
  }
  func.func @transform_7(%arg0: i32) -> (i32, i32) {
    %c0_i32 = arith.constant 0 : i32
    %c0_i32_0 = arith.constant 0 : i32
    %c0_i32_1 = arith.constant 0 : i32
    return %c0_i32, %c0_i32_0 : i32, i32
  }
  func.func @transform_8(%arg0: i32) -> (i32, i32) {
    %c0_i32 = arith.constant 0 : i32
    %c0_i32_0 = arith.constant 0 : i32
    %c0_i32_1 = arith.constant 0 : i32
    return %c0_i32, %c0_i32_0 : i32, i32
  }
  func.func @transform_9(%arg0: i32) -> (i32, i32) {
    %c0_i32 = arith.constant 0 : i32
    %c0_i32_0 = arith.constant 0 : i32
    %c0_i32_1 = arith.constant 0 : i32
    return %c0_i32, %c0_i32_0 : i32, i32
  }
  func.func @transform_10(%arg0: i32) -> (i32, i32) {
    %c0_i32 = arith.constant 0 : i32
    %c0_i32_0 = arith.constant 0 : i32
    %c0_i32_1 = arith.constant 0 : i32
    return %c0_i32, %c0_i32_0 : i32, i32
  }
  func.func @transform_11(%arg0: i32) -> (i32, i32) {
    %c0_i32 = arith.constant 0 : i32
    %c0_i32_0 = arith.constant 0 : i32
    %c0_i32_1 = arith.constant 0 : i32
    return %c0_i32, %c0_i32_0 : i32, i32
  }
  func.func @transform_12(%arg0: i32) -> (i32, i32) {
    %c0_i32 = arith.constant 0 : i32
    %c0_i32_0 = arith.constant 0 : i32
    %c0_i32_1 = arith.constant 0 : i32
    return %c0_i32, %c0_i32_0 : i32, i32
  }
  func.func @transform_13(%arg0: i32) -> (i32, i32) {
    %c0_i32 = arith.constant 0 : i32
    %c0_i32_0 = arith.constant 0 : i32
    %c0_i32_1 = arith.constant 0 : i32
    return %c0_i32, %c0_i32_0 : i32, i32
  }
  func.func @transform_14(%arg0: i32) -> (i32, i32) {
    %c0_i32 = arith.constant 0 : i32
    %c0_i32_0 = arith.constant 0 : i32
    %c0_i32_1 = arith.constant 0 : i32
    return %c0_i32, %c0_i32_0 : i32, i32
  }
  func.func @transform_15(%arg0: i32) -> (i32, i32) {
    %c0_i32 = arith.constant 0 : i32
    %c0_i32_0 = arith.constant 0 : i32
    %c0_i32_1 = arith.constant 0 : i32
    return %c0_i32, %c0_i32_0 : i32, i32
  }
  func.func @transform_16(%arg0: i32) -> (i32, i32) {
    %c0_i32 = arith.constant 0 : i32
    %c0_i32_0 = arith.constant 0 : i32
    %c0_i32_1 = arith.constant 0 : i32
    return %c0_i32, %c0_i32_0 : i32, i32
  }
  func.func @transform_17(%arg0: i32) -> (i32, i32) {
    %c0_i32 = arith.constant 0 : i32
    %c0_i32_0 = arith.constant 0 : i32
    return %arg0, %c0_i32 : i32, i32
  }
  func.func @transform_18(%arg0: i32) -> (i32, i32) {
    %c0_i32 = arith.constant 0 : i32
    %c0_i32_0 = arith.constant 0 : i32
    return %arg0, %c0_i32 : i32, i32
  }
}

</mosaic_0001>

<bundles_post_ra>
// kernel: run.1
= control target key start
LH: loop header
LB: loop body
LE: loop exit
PB: predicated region body
PF: predicated region fallthrough
CT: control target
= control target key end

     0   :  { %s2975_s0 = inlined_call_operand.vmem [shape: f32[16,784], index: 0, kind: input, shape index: {}]   ;;  %s2976_s1 = inlined_call_operand.vmem [shape: bf16[784,128], index: 1, kind: input, shape index: {}]   ;;  %s2977_s2 = inlined_call_operand.vmem [shape: f32[1,128], index: 2, kind: input, shape index: {}]   ;;  %s2978_s3 = inlined_call_operand.vmem [shape: bf16[128,64], index: 3, kind: input, shape index: {}]   ;;  %s2979_s4 = inlined_call_operand.vmem [shape: f32[1,64], index: 4, kind: input, shape index: {}]   ;;  %s2980_s5 = inlined_call_operand.vmem [shape: bf16[64,12], index: 5, kind: input, shape index: {}]   ;;  %s2981_s6 = inlined_call_operand.vmem [shape: f32[1,12], index: 6, kind: input, shape index: {}]   ;;  %s2982_s7 = inlined_call_operand.vmem [shape: bf16[12,128], index: 7, kind: input, shape index: {}]   ;;  %s2983_s8 = inlined_call_operand.vmem [shape: f32[1,128], index: 8, kind: input, shape index: {}]   ;;  %s2984_s9 = inlined_call_operand.vmem [shape: bf16[128,12], index: 9, kind: input, shape index: {}]   ;;  %s2985_s10 = inlined_call_operand.vmem [shape: f32[1,12], index: 10, kind: input, shape index: {}]   ;;  %s2986_s11 = inlined_call_operand.vmem [shape: bf16[12,64], index: 11, kind: input, shape index: {}]   ;;  %s2987_s12 = inlined_call_operand.vmem [shape: f32[1,64], index: 12, kind: input, shape index: {}]   ;;  %s2988_s13 = inlined_call_operand.vmem [shape: bf16[64,128], index: 13, kind: input, shape index: {}]   ;;  %s2989_s14 = inlined_call_operand.vmem [shape: f32[1,128], index: 14, kind: input, shape index: {}]   ;;  %s2990_s15 = inlined_call_operand.vmem [shape: bf16[128,784], index: 15, kind: input, shape index: {}]   ;;  %s2991_s16 = inlined_call_operand.vmem [shape: f32[1,784], index: 16, kind: input, shape index: {}]   ;;  %s2992_s17 = inlined_call_operand.vmem [shape: f32[16,128], index: 17, kind: output, shape index: {0}]   ;;  %s2993_s18 = inlined_call_operand.hbm [shape: f32[16,784], index: 18, kind: output, shape index: {1}]  }
   0x1   :  { %2996 = sst [smem:[#allocation5_spill]] %s2975_s0 }
   0x2   :  { %2997 = sst [smem:[#allocation6_spill]] %s2976_s1 }
   0x3   :  { %2998 = sst [smem:[#allocation7_spill]] %s2977_s2 }
   0x4   :  { %s2999_s29 = sld [smem:[#allocation6_spill]] }
   0xa   :  { %v2029_v0 = vld [vmem:[%s2999_s29 + $0x38] sm:$0xff]  ;;  %v2028_v4 = vld [vmem:[%s2999_s29 + $0x30] sm:$0xff]  ;;  %v2027_v8 = vld [vmem:[%s2999_s29 + $0x28] sm:$0xff] }
   0xb   :  { %v2037_v1 = vld [vmem:[%s2999_s29 + $0x78] sm:$0xff]  ;;  %481 = vmatpush.bf16.msra.mxu0 %v2029_v0  ;;  %v2036_v5 = vld [vmem:[%s2999_s29 + $0x70] sm:$0xff]  ;;  %v2035_v9 = vld [vmem:[%s2999_s29 + $0x68] sm:$0xff] }
   0xc   :  { %v2045_v2 = vld [vmem:[%s2999_s29 + $0xb8] sm:$0xff]  ;;  %495 = vmatpush.bf16.msra.mxu1 %v2037_v1  ;;  %v2044_v6 = vld [vmem:[%s2999_s29 + $0xb0] sm:$0xff]  ;;  %v2043_v10 = vld [vmem:[%s2999_s29 + $0xa8] sm:$0xff] }
   0xd   :  { %v2053_v3 = vld [vmem:[%s2999_s29 + $0xf8] sm:$0xff]  ;;  %509 = vmatpush.bf16.msra.mxu2 %v2045_v2  ;;  %v2052_v7 = vld [vmem:[%s2999_s29 + $0xf0] sm:$0xff]  ;;  %v2051_v11 = vld [vmem:[%s2999_s29 + $0xe8] sm:$0xff] }
   0xe   :  { %523 = vmatpush.bf16.msra.mxu3 %v2053_v3  ;;  %v2026_v12 = vld [vmem:[%s2999_s29 + $0x20] sm:$0xff]  ;;  %v2025_v16 = vld [vmem:[%s2999_s29 + $0x18] sm:$0xff]  ;;  %v2024_v20 = vld [vmem:[%s2999_s29 + $0x10] sm:$0xff] }
   0xf   :  { %482 = vmatpush.bf16.msra.mxu0 %v2028_v4  ;;  %v2034_v13 = vld [vmem:[%s2999_s29 + $0x60] sm:$0xff]  ;;  %v2033_v17 = vld [vmem:[%s2999_s29 + $0x58] sm:$0xff]  ;;  %v2032_v21 = vld [vmem:[%s2999_s29 + $0x50] sm:$0xff] }
  0x10   :  { %496 = vmatpush.bf16.msra.mxu1 %v2036_v5  ;;  %v2042_v14 = vld [vmem:[%s2999_s29 + $0xa0] sm:$0xff]  ;;  %v2041_v18 = vld [vmem:[%s2999_s29 + $0x98] sm:$0xff]  ;;  %v2040_v22 = vld [vmem:[%s2999_s29 + $0x90] sm:$0xff] }
  0x11   :  { %510 = vmatpush.bf16.msra.mxu2 %v2044_v6  ;;  %v2050_v15 = vld [vmem:[%s2999_s29 + $0xe0] sm:$0xff]  ;;  %v2049_v19 = vld [vmem:[%s2999_s29 + $0xd8] sm:$0xff]  ;;  %v2048_v23 = vld [vmem:[%s2999_s29 + $0xd0] sm:$0xff] }
  0x12   :  { %524 = vmatpush.bf16.msra.mxu3 %v2052_v7 }
  0x13   :  { %483 = vmatpush.bf16.msra.mxu0 %v2027_v8 }
  0x14   :  { %497 = vmatpush.bf16.msra.mxu1 %v2035_v9 }
  0x15   :  { %511 = vmatpush.bf16.msra.mxu2 %v2043_v10 }
  0x16   :  { %525 = vmatpush.bf16.msra.mxu3 %v2051_v11 }
  0x17   :  { %484 = vmatpush.bf16.msra.mxu0 %v2026_v12 }
  0x18   :  { %498 = vmatpush.bf16.msra.mxu1 %v2034_v13 }
  0x19   :  { %512 = vmatpush.bf16.msra.mxu2 %v2042_v14 }
  0x1a   :  { %526 = vmatpush.bf16.msra.mxu3 %v2050_v15 }
  0x1b   :  { %485 = vmatpush.bf16.msra.mxu0 %v2025_v16 }
  0x1c   :  { %499 = vmatpush.bf16.msra.mxu1 %v2033_v17 }
  0x1d   :  { %513 = vmatpush.bf16.msra.mxu2 %v2041_v18 }
  0x1e   :  { %527 = vmatpush.bf16.msra.mxu3 %v2049_v19 }
  0x1f   :  { %24 = vsyncpa [#allocation3], 0  ;;  %486 = vmatpush.bf16.msra.mxu0 %v2024_v20  ;;  %v2023_v24 = vld [vmem:[%s2999_s29 + $0x8] sm:$0xff]  ;;  %v2022_v28 = vld [vmem:[%s2999_s29] sm:$0xff]  ;;  %s3000_s20 = sld [smem:[#allocation5_spill]]  ;;  %vm477_vm0 = vcmask 130048  }
  0x20   :  { %500 = vmatpush.bf16.msra.mxu1 %v2032_v21  ;;  %v2031_v25 = vld [vmem:[%s2999_s29 + $0x48] sm:$0xff]  ;;  %v2030_v29 = vld [vmem:[%s2999_s29 + $0x40] sm:$0xff]  ;;  %v2061_v34 = vld [vmem:[%s2999_s29 + $0x138] sm:$0xff]  ;;  %s3001_s22 = sld [smem:[#allocation7_spill]]  ;;  %vm739_vm1 = vcmask 1045504   ;;  %vm703_vm2 = vcmask 523264  }
  0x21   :  { %514 = vmatpush.bf16.msra.mxu2 %v2040_v22  ;;  %v2039_v26 = vld [vmem:[%s2999_s29 + $0x88] sm:$0xff]  ;;  %v2069_v35 = vld [vmem:[%s2999_s29 + $0x178] sm:$0xff]  ;;  %v2038_v36 = vld [vmem:[%s2999_s29 + $0x80] sm:$0xff]  ;;  %vm735_vm3 = vcmask 97280  }
  0x22   :  { %528 = vmatpush.bf16.msra.mxu3 %v2048_v23  ;;  %v2047_v27 = vld [vmem:[%s2999_s29 + $0xc8] sm:$0xff]  ;;  %v2046_v37 = vld [vmem:[%s2999_s29 + $0xc0] sm:$0xff]  ;;  %v2060_v45 = vld [vmem:[%s2999_s29 + $0x130] sm:$0xff] }
  0x23   :  { %487 = vmatpush.bf16.msra.mxu0 %v2023_v24  ;;  %v2070_v44 = vld [vmem:[%s2999_s29 + $0x180] sm:$0xff]  ;;  %v2068_v46 = vld [vmem:[%s2999_s29 + $0x170] sm:$0xff]  ;;  %v2059_v49 = vld [vmem:[%s2999_s29 + $0x128] sm:$0xff] }
  0x24   :  { %501 = vmatpush.bf16.msra.mxu1 %v2031_v25  ;;  %v2067_v50 = vld [vmem:[%s2999_s29 + $0x168] sm:$0xff]  ;;  %v2058_v51 = vld [vmem:[%s2999_s29 + $0x120] sm:$0xff]  ;;  %v2057_v53 = vld [vmem:[%s2999_s29 + $0x118] sm:$0xff] }
  0x25   :  { %v60_v30 = vld [vmem:[%s3000_s20] sm:$0xff]  ;;  %v67_v31 = vld [vmem:[%s3000_s20 + $0x38] sm:$0xff]  ;;  %v61_v32 = vld [vmem:[%s3000_s20 + $0x8] sm:$0xff]  ;;  %515 = vmatpush.bf16.msra.mxu2 %v2039_v26 }
  0x26   :  { %v68_v33 = vld [vmem:[%s3000_s20 + $0x40] sm:$0xff]  ;;  %529 = vmatpush.bf16.msra.mxu3 %v2047_v27  ;;  %v62_v38 = vld [vmem:[%s3000_s20 + $0x10] sm:$0xff]  ;;  %v69_v39 = vld [vmem:[%s3000_s20 + $0x48] sm:$0xff]  ;;  %v74_v40 = vpack.c.bf16 %v67_v31, %v60_v30 }
  0x27   :  { %v63_v41 = vld [vmem:[%s3000_s20 + $0x18] sm:$0xff]  ;;  %v70_v42 = vld [vmem:[%s3000_s20 + $0x50] sm:$0xff]  ;;  %v75_v43 = vpack.c.bf16 %v68_v33, %v61_v32  ;;  %488 = vmatpush.bf16.msra.mxu0 %v2022_v28  ;;  %v76_v47 = vpack.c.bf16 %v69_v39, %v62_v38  ;;  %v2066_v52 = vld [vmem:[%s2999_s29 + $0x160] sm:$0xff] }
  0x28   :  { %502 = vmatpush.bf16.msra.mxu1 %v2030_v29  ;;  %v77_v48 = vpack.c.bf16 %v70_v42, %v63_v41  ;;  %v2065_v54 = vld [vmem:[%s2999_s29 + $0x158] sm:$0xff]  ;;  %v66_v55 = vld [vmem:[%s3000_s20 + $0x30] sm:$0xff]  ;;  %v73_v56 = vld [vmem:[%s3000_s20 + $0x68] sm:$0xff] }
  0x29   :  { %516 = vmatpush.bf16.msra.mxu2 %v2038_v36  ;;  %v2056_v57 = vld [vmem:[%s2999_s29 + $0x110] sm:$0xff]  ;;  %v80_v59 = vpack.c.bf16 %v73_v56, %v66_v55  ;;  %v2055_v60 = vld [vmem:[%s2999_s29 + $0x108] sm:$0xff]  ;;  %v2054_v62 = vld [vmem:[%s2999_s29 + $0x100] sm:$0xff] }
  0x2a   :  { %530 = vmatpush.bf16.msra.mxu3 %v2046_v37  ;;  %489 = vmatmul.bf16.vlgmr.msra.gmra.mxu0 %v74_v40  ;;  %v2064_v58 = vld [vmem:[%s2999_s29 + $0x150] sm:$0xff]  ;;  %v2063_v61 = vld [vmem:[%s2999_s29 + $0x148] sm:$0xff]  ;;  %v2062_v63 = vld [vmem:[%s2999_s29 + $0x140] sm:$0xff] }
  0x2b   :  { %537 = vmatpush.bf16.msrb.mxu0 %v2061_v34  ;;  %503 = vmatmul.bf16.vlgmr.msra.gmra.mxu1 %v75_v43  ;;  %v64_v0 = vld [vmem:[%s3000_s20 + $0x20] sm:$0xff]  ;;  %v71_v1 = vld [vmem:[%s3000_s20 + $0x58] sm:$0xff]  ;;  %v65_v2 = vld [vmem:[%s3000_s20 + $0x28] sm:$0xff] }
  0x2c   :  { %551 = vmatpush.bf16.msrb.mxu1 %v2069_v35  ;;  %517 = vmatmul.bf16.vlgmr.msra.gmra.mxu2 %v76_v47  ;;  %v72_v3 = vld [vmem:[%s3000_s20 + $0x60] sm:$0xff]  ;;  %v78_v4 = vpack.c.bf16 %v71_v1, %v64_v0  ;;  %v2078_v6 = vld [vmem:[%s2978_s3 + $0x38] sm:$0xff]  ;;  %v2077_v7 = vld [vmem:[%s2978_s3 + $0x30] sm:$0xff]  ;;  %s2219_s20 = smov 56  }
  0x2d   :  { %572 = vmatpush.bf16.msrb.mxu2 %v2070_v44  ;;  %531 = vmatmul.bf16.vlgmr.msra.gmra.mxu3 %v77_v48  ;;  %v79_v5 = vpack.c.bf16 %v72_v3, %v65_v2  ;;  %v2076_v8 = vld [vmem:[%s2978_s3 + $0x28] sm:$0xff]  ;;  %v2075_v9 = vld [vmem:[%s2978_s3 + $0x20] sm:$0xff]  ;;  %v2074_v10 = vld [vmem:[%s2978_s3 + $0x18] sm:$0xff] }
  0x2e   :  { %650 = vmatpush.bf16.msrb.mxu3 %v2078_v6  ;;  %v2073_v11 = vld [vmem:[%s2978_s3 + $0x10] sm:$0xff]  ;;  %v2072_v12 = vld [vmem:[%s2978_s3 + $0x8] sm:$0xff]  ;;  %v2071_v16 = vld [vmem:[%s2978_s3] sm:$0xff] }
  0x2f   :  { %538 = vmatpush.bf16.msrb.mxu0 %v2060_v45  ;;  %v2156_v17 = vld [vmem:[%s3001_s22] ss:$0 sm:$0xff]  ;;  %v2082_v18 = vld [vmem:[%s2980_s5 + $0x18] sm:$0xff]  ;;  %v2081_v47 = vld [vmem:[%s2980_s5 + $0x10] sm:$0xff] }
  0x30   :  { %552 = vmatpush.bf16.msrb.mxu1 %v2068_v46  ;;  %v2080_v48 = vld [vmem:[%s2980_s5 + $0x8] sm:$0xff]  ;;  %v2157_v55 = vld [vmem:[%s2979_s4] ss:$0 sm:$0xff]  ;;  %v2087_v2 = vld [vmem:[%s2984_s9 + $0x18] sm:$0xff] }
  0x31   :  { %711 = vmatpush.bf16.msra.mxu2 %v2082_v18  ;;  %v2089_v0 = vld [vmem:[%s2984_s9 + $0x28] sm:$0xff]  ;;  %v2088_v1 = vld [vmem:[%s2984_s9 + $0x20] sm:$0xff] }
  0x32   :  { %651 = vmatpush.bf16.msrb.mxu3 %v2077_v7  ;;  %v2159_v18 = vld [vmem:[%s2983_s8] ss:$0 sm:$0xff]  ;;  %s2218_s8 = smov 896  }
  0x33   :  { %539 = vmatpush.bf16.msrb.mxu0 %v2059_v49  ;;  %v2079_v49 = vld [vmem:[%s2980_s5] sm:$0xff] }
  0x34   :  { %553 = vmatpush.bf16.msrb.mxu1 %v2067_v50  ;;  %v1741_v50 = vld [vmem:[%s2982_s7] sm:$0xf] }
  0x35   :  { %712 = vmatpush.bf16.msra.mxu2 %v2081_v47  ;;  %v2139_v47 = vld [vmem:[%s2990_s15 + $0x154] sm:$0xf] }
  0x36   :  { %652 = vmatpush.bf16.msrb.mxu3 %v2076_v8 }
  0x37   :  { %540 = vmatpush.bf16.msrb.mxu0 %v2058_v51  ;;  %v2083_v51 = vld [vmem:[%s2982_s7] sm:$0x30] }
  0x38   :  { %554 = vmatpush.bf16.msrb.mxu1 %v2066_v52  ;;  %v1742_v52 = vor.u32 %v2083_v51, %v1741_v50  ;;  %v1976_v50 = vld [vmem:[%s2990_s15 + $0x158] sm:$0xf]  ;;  %v2143_v51 = vld [vmem:[%s2990_s15 + $0x170] sm:$0xf0] }
  0x39   :  { %713 = vmatpush.bf16.msra.mxu2 %v2080_v48 }
  0x3a   :  { %653 = vmatpush.bf16.msrb.mxu3 %v2075_v9 }
  0x3b   :  { %541 = vmatpush.bf16.msrb.mxu0 %v2057_v53  ;;  %v741_v53 = vsel %vm739_vm1, %v1742_v52, 0 }
  0x3c   :  { %555 = vmatpush.bf16.msrb.mxu1 %v2065_v54  ;;  %1689 = vmatmul.msk.bf16.vlgmr.msrb.gmra.mxu2 %vm477_vm0, %v80_v59 }
  0x3d   :  { %714 = vmatpush.bf16.msra.mxu2 %v2079_v49  ;;  %v1970_v49 = vld [vmem:[%s2990_s15 + $0x16c] sm:$0xf0] }
  0x3e   :  { %654 = vmatpush.bf16.msrb.mxu3 %v2074_v10  ;;  %v1973_v52 = vor.u32 %v2139_v47, %v1970_v49 }
  0x3f   :  { %542 = vmatpush.bf16.msrb.mxu0 %v2056_v57 }
  0x40   :  { %556 = vmatpush.bf16.msrb.mxu1 %v2064_v58 }
  0x42   :  { %655 = vmatpush.bf16.msrb.mxu3 %v2073_v11  ;;  %v2086_v11 = vld [vmem:[%s2984_s9 + $0x10] sm:$0xff] }
  0x43   :  { %543 = vmatpush.bf16.msrb.mxu0 %v2055_v60 }
  0x44   :  { %557 = vmatpush.bf16.msrb.mxu1 %v2063_v61 }
  0x46   :  { %656 = vmatpush.bf16.msrb.mxu3 %v2072_v12  ;;  %v2085_v12 = vld [vmem:[%s2984_s9 + $0x8] sm:$0xff] }
  0x47   :  { %544 = vmatpush.bf16.msrb.mxu0 %v2054_v62  ;;  %v2091_v62 = vld [vmem:[%s2984_s9 + $0x38] sm:$0xff] }
  0x48   :  { %558 = vmatpush.bf16.msrb.mxu1 %v2062_v63  ;;  %v2090_v63 = vld [vmem:[%s2984_s9 + $0x30] sm:$0xff] }
  0x4a   :  { %545 = vmatmul.bf16.vlgmr.msrb.gmra.mxu0 %v78_v4  ;;  %657 = vmatpush.bf16.msrb.mxu3 %v2071_v16  ;;  %v2158_v4 = vld [vmem:[%s2981_s6] ss:$0 sm:$0xff] }
  0x4b   :  { %559 = vmatmul.bf16.vlgmr.msrb.gmra.mxu1 %v79_v5  ;;  %750 = vmatpush.bf16.msra.mxu0 %v741_v53  ;;  %v1977_v53 = vor.u32 %v2143_v51, %v1976_v50  ;;  %v1800_v50 = vld [vmem:[%s2990_s15] sm:$0xf]  ;;  %v2100_v51 = vld [vmem:[%s2990_s15 + $0x18] sm:$0xf0] }
  0x4c   :  { %826 = vmatpush.bf16.msra.mxu1 %v2091_v62  ;;  %v2128_v62 = vld [vmem:[%s2990_s15 + $0xf8] sm:$0xf0] }
  0x50   :  { %827 = vmatpush.bf16.msra.mxu1 %v2090_v63 }
  0x54   :  { %828 = vmatpush.bf16.msra.mxu1 %v2089_v0 }
  0x58   :  { %829 = vmatpush.bf16.msra.mxu1 %v2088_v1  ;;  %v2125_v1 = vld [vmem:[%s2990_s15 + $0xe4] sm:$0xf] }
  0x5c   :  { %830 = vmatpush.bf16.msra.mxu1 %v2087_v2  ;;  %v2147_v2 = vld [vmem:[%s2990_s15 + $0x194] sm:$0xf] }
  0x60   :  { %831 = vmatpush.bf16.msra.mxu1 %v2086_v11  ;;  %v2121_v11 = vld [vmem:[%s2990_s15 + $0xc0] sm:$0xf0] }
  0x64   :  { %832 = vmatpush.bf16.msra.mxu1 %v2085_v12  ;;  %v1978_v12 = vld [vmem:[%s2990_s15 + $0x174] sm:$0xf0] }
  0xa7   :  { %v490_v13 = vpop.f32.mrf.mxu0 }
  0xa8   :  { %v504_v14 = vpop.f32.mrf.mxu1  ;;  %v491_v19 = vadd.f32 %v2156_v17, %v490_v13  ;;  %v2084_v13 = vld [vmem:[%s2984_s9] sm:$0xff] }
  0xa9   :  { %833 = vmatpush.bf16.msra.mxu1 %v2084_v13 }
  0xaa   :  { %v505_v23 = vadd.f32 %v504_v14, %v491_v19  ;;  %v1778_v14 = vld [vmem:[%s2986_s11] sm:$0xf] }
  0xaf   :  { %v518_v15 = vpop.f32.mrf.mxu2  ;;  %v492_v20 = vpop.f32.mrf.mxu0 }
  0xb0   :  { %v506_v21 = vpop.f32.mrf.mxu1  ;;  %v532_v24 = vpop.f32.mrf.mxu3  ;;  %v493_v25 = vadd.f32 %v2156_v17, %v492_v20  ;;  %v519_v26 = vadd.f32 %v518_v15, %v505_v23  ;;  %v2092_v15 = vld [vmem:[%s2986_s11] sm:$0x30] }
  0xb1   :  { %v1779_v16 = vor.u32 %v2092_v15, %v1778_v14  ;;  %v2118_v15 = vld [vmem:[%s2990_s15 + $0xac] sm:$0xf] }
  0xb2   :  { %v507_v27 = vadd.f32 %v506_v21, %v493_v25  ;;  %v533_v30 = vadd.f32 %v532_v24, %v519_v26  ;;  %v2096_v24 = vld [vmem:[%s2988_s13 + $0x18] sm:$0xff]  ;;  %v2160_v26 = vld [vmem:[%s2985_s10] ss:$0 sm:$0xff] }
  0xb3   :  { %v858_v17 = vsel %vm739_vm1, %v1779_v16, 0  ;;  %920 = vmatpush.bf16.msra.mxu3 %v2096_v24  ;;  %v1886_v16 = vld [vmem:[%s2990_s15 + $0xc4] sm:$0xf0]  ;;  %v2114_v24 = vld [vmem:[%s2990_s15 + $0x88] sm:$0xf0] }
  0xb4   :  { %867 = vmatpush.bf16.msrb.mxu2 %v858_v17  ;;  %v1892_v17 = vld [vmem:[%s2990_s15 + $0xb0] sm:$0xf] }
  0xb7   :  { %v520_v22 = vpop.f32.mrf.mxu2 }
  0xb8   :  { %v521_v32 = vadd.f32 %v520_v22, %v507_v27  ;;  %v534_v34 = vpop.f32.mrf.mxu3 }
  0xba   :  { %v535_v35 = vadd.f32 %v534_v34, %v521_v32  ;;  %v2094_v34 = vld [vmem:[%s2988_s13 + $0x8] sm:$0xff] }
  0xbf   :  { %v574_v31 = vpop.f32.mrf.mxu2 }
  0xc7   :  { %v546_v28 = vpop.f32.mrf.mxu0  ;;  %v576_v42 = vpop.f32.mrf.mxu2 }
  0xc8   :  { %v560_v29 = vpop.f32.mrf.mxu1  ;;  %v547_v33 = vadd.f32 %v546_v28, %v533_v30 }
  0xca   :  { %v561_v36 = vadd.f32 %v560_v29, %v547_v33  ;;  %v2095_v33 = vld [vmem:[%s2988_s13 + $0x10] sm:$0xff] }
  0xcb   :  { %921 = vmatpush.bf16.msra.mxu3 %v2095_v33  ;;  %v1864_v33 = vld [vmem:[%s2990_s15 + $0x78] sm:$0xf] }
  0xcc   :  { %v575_v40 = vadd.f32 %v574_v31, %v561_v36  ;;  %v1996_v36 = vld [vmem:[%s2990_s15 + $0x188] sm:$0xf] }
  0xce   :  { %v579_v44 = vmax.f32 %v575_v40, 0.0  ;;  %v1998_v40 = vld [vmem:[%s2990_s15 + $0x1a4] sm:$0xf0] }
  0xcf   :  { %v548_v37 = vpop.f32.mrf.mxu0  ;;  %922 = vmatpush.bf16.msra.mxu3 %v2094_v34  ;;  %v2115_v34 = vld [vmem:[%s2990_s15 + $0x90] sm:$0xf0] }
  0xd0   :  { %v549_v38 = vadd.f32 %v548_v37, %v535_v35  ;;  %v562_v39 = vpop.f32.mrf.mxu1  ;;  %v2093_v35 = vld [vmem:[%s2988_s13] sm:$0xff] }
  0xd1   :  { %v2149_v37 = vld [vmem:[%s2990_s15 + $0x1a0] sm:$0xf0] }
  0xd2   :  { %v563_v41 = vadd.f32 %v562_v39, %v549_v38  ;;  %v2146_v38 = vld [vmem:[%s2990_s15 + $0x18c] sm:$0xf]  ;;  %v1997_v39 = vor.u32 %v2149_v37, %v1996_v36 }
  0xd3   :  { %923 = vmatpush.bf16.msra.mxu3 %v2093_v35  ;;  %v2161_v35 = vld [vmem:[%s2987_s12] ss:$0 sm:$0xff]  ;;  %s1479_s12 = sshll.u32 %s2993_s18, 4  ;;  %s1480_s12 = int_to_ptr.hbm [resolvable:$true] %s1479_s12 }
  0xd4   :  { %v577_v43 = vadd.f32 %v576_v42, %v563_v41  ;;  %v2004_v41 = vld [vmem:[%s2990_s15 + $0x190] sm:$0xf]  ;;  %v2150_v42 = vld [vmem:[%s2990_s15 + $0x1a8] sm:$0xf0]  ;;  %1301 = vmatpush.bf16.msrb.mxu0 %v1997_v39  ;;  %v1865_v39 = vor.u32 %v2115_v34, %v1864_v33 }
  0xd5   :  { %v1964_v33 = vld [vmem:[%s2990_s15 + $0x130] sm:$0xf]  ;;  %v2138_v34 = vld [vmem:[%s2990_s15 + $0x148] sm:$0xf0] }
  0xd6   :  { %v580_v45 = vmax.f32 %v577_v43, 0.0  ;;  %v2001_v43 = vor.u32 %v2146_v38, %v1998_v40  ;;  %v1828_v40 = vld [vmem:[%s2990_s15 + $0x38] sm:$0xf] }
  0xd8   :  { %v581_v46 = vpack.c.bf16 %v580_v45, %v579_v44  ;;  %v2005_v44 = vor.u32 %v2150_v42, %v2004_v41  ;;  %v1968_v45 = vld [vmem:[%s2990_s15 + $0x150] sm:$0xf]  ;;  %v2107_v41 = vld [vmem:[%s2990_s15 + $0x50] sm:$0xf0]  ;;  %v2104_v42 = vld [vmem:[%s2990_s15 + $0x3c] sm:$0xf] }
  0xda   :  { %658 = vmatmul.bf16.vlgmr.msrb.gmra.mxu3 %v581_v46  ;;  %v2142_v46 = vld [vmem:[%s2990_s15 + $0x168] sm:$0xf0] }
  0xdb   :  { %v1969_v48 = vor.u32 %v2142_v46, %v1968_v45  ;;  %1329 = vmatpush.bf16.msrb.mxu3 %v2005_v44  ;;  %v1836_v44 = vld [vmem:[%s2990_s15 + $0x40] sm:$0xf]  ;;  %v2108_v45 = vld [vmem:[%s2990_s15 + $0x58] sm:$0xf0]  ;;  %v1829_v46 = vor.u32 %v2107_v41, %v1828_v40  ;;  %v2130_v40 = vld [vmem:[%s2990_s15 + $0x108] sm:$0xf0] }
  0xdc   :  { %v1837_v49 = vor.u32 %v2108_v45, %v1836_v44  ;;  %v2127_v41 = vld [vmem:[%s2990_s15 + $0xf4] sm:$0xf]  ;;  %v1936_v45 = vld [vmem:[%s2990_s15 + $0xf8] sm:$0xf] }
  0xdd   :  { %1302 = vmatpush.bf16.msrb.mxu0 %v1969_v48 }
  0xdf   :  { %1330 = vmatpush.bf16.msrb.mxu3 %v1977_v53  ;;  %v2097_v53 = vld [vmem:[%s2990_s15 + $0x4] sm:$0xf] }
 0x15d   :  { %v659_v54 = vpop.f32.mrf.mxu3 }
 0x15e   :  { %v660_v56 = vadd.f32 %v2157_v55, %v659_v54  ;;  %v1940_v54 = vld [vmem:[%s2990_s15 + $0x118] sm:$0xf] }
 0x160   :  { %v664_v59 = vmax.f32 %v660_v56, 0.0  ;;  %v2132_v56 = vld [vmem:[%s2990_s15 + $0x11c] sm:$0xf] }
 0x165   :  { %v661_v57 = vpop.f32.mrf.mxu3 }
 0x166   :  { %v662_v58 = vadd.f32 %v2157_v55, %v661_v57  ;;  %v2135_v55 = vld [vmem:[%s2990_s15 + $0x130] sm:$0xf0]  ;;  %v1942_v57 = vld [vmem:[%s2990_s15 + $0x134] sm:$0xf0] }
 0x167   :  { %v1945_v63 = vor.u32 %v2132_v56, %v1942_v57  ;;  %v1808_v56 = vld [vmem:[%s2990_s15 + $0x8] sm:$0xf]  ;;  %v2101_v57 = vld [vmem:[%s2990_s15 + $0x20] sm:$0xf0] }
 0x168   :  { %v665_v60 = vmax.f32 %v662_v58, 0.0  ;;  %v1948_v58 = vld [vmem:[%s2990_s15 + $0x120] sm:$0xf] }
 0x16a   :  { %v666_v61 = vpack.c.bf16 %v665_v60, %v664_v59  ;;  %v2136_v59 = vld [vmem:[%s2990_s15 + $0x138] sm:$0xf0]  ;;  %v1941_v60 = vor.u32 %v2135_v55, %v1940_v54  ;;  %v1802_v54 = vld [vmem:[%s2990_s15 + $0x1c] sm:$0xf0] }
 0x16b   :  { %v1949_v0 = vor.u32 %v2136_v59, %v1948_v58  ;;  %v1801_v58 = vor.u32 %v2100_v51, %v1800_v50  ;;  %v2120_v50 = vld [vmem:[%s2990_s15 + $0xbc] sm:$0xf] }
 0x16c   :  { %1738 = vmatmul.msk.bf16.vlgmr.msra.gmra.mxu2 %vm703_vm2, %v666_v61  ;;  %v1912_v61 = vld [vmem:[%s2990_s15 + $0xe0] sm:$0xf]  ;;  %1303 = vmatpush.bf16.msrb.mxu0 %v1941_v60 }
 0x16d   :  { %1315 = vmatpush.bf16.msra.mxu2 %v2001_v43  ;;  %1331 = vmatpush.bf16.msrb.mxu3 %v1949_v0  ;;  %v1830_v43 = vld [vmem:[%s2990_s15 + $0x54] sm:$0xf0]  ;;  %v2119_v0 = vld [vmem:[%s2990_s15 + $0xb4] sm:$0xf] }
 0x16e   :  { %v1833_v48 = vor.u32 %v2104_v42, %v1830_v43  ;;  %v1930_v42 = vld [vmem:[%s2990_s15 + $0x10c] sm:$0xf0] }
 0x16f   :  { %v1933_v44 = vor.u32 %v2127_v41, %v1930_v42 }
 0x171   :  { %1316 = vmatpush.bf16.msra.mxu2 %v1973_v52 }
 0x175   :  { %1317 = vmatpush.bf16.msra.mxu2 %v1945_v63 }
 0x1ef   :  { %v716_v3 = vpop.f32.mrf.mxu2 }
 0x1f0   :  { %v717_v5 = vadd.f32 %v2158_v4, %v716_v3  ;;  %v2006_v3 = vld [vmem:[%s2990_s15 + $0x1ac] sm:$0xf0] }
 0x1f2   :  { %v721_v8 = vmax.f32 %v717_v5, 0.0  ;;  %v1920_v5 = vld [vmem:[%s2990_s15 + $0xe8] sm:$0xf] }
 0x1f7   :  { %v718_v6 = vpop.f32.mrf.mxu2 }
 0x1f8   :  { %v719_v7 = vadd.f32 %v2158_v4, %v718_v6  ;;  %v1914_v4 = vld [vmem:[%s2990_s15 + $0xfc] sm:$0xf0]  ;;  %v2129_v6 = vld [vmem:[%s2990_s15 + $0x100] sm:$0xf0] }
 0x1f9   :  { %v1917_v13 = vor.u32 %v2125_v1, %v1914_v4  ;;  %v1921_v14 = vor.u32 %v2129_v6, %v1920_v5  ;;  %v1894_v1 = vld [vmem:[%s2990_s15 + $0xcc] sm:$0xf0]  ;;  %v2151_v4 = vld [vmem:[%s2990_s15 + $0x1b0] sm:$0xf0]  ;;  %v2148_v5 = vld [vmem:[%s2990_s15 + $0x19c] sm:$0xf] }
 0x1fa   :  { %v722_v9 = vmax.f32 %v719_v7, 0.0  ;;  %v2009_v7 = vor.u32 %v2147_v2, %v2006_v3  ;;  %v2012_v2 = vld [vmem:[%s2990_s15 + $0x198] sm:$0xf]  ;;  %v1897_v3 = vor.u32 %v2119_v0, %v1894_v1 }
 0x1fb   :  { %1318 = vmatpush.bf16.msra.mxu2 %v1917_v13  ;;  %1332 = vmatpush.bf16.msrb.mxu3 %v1921_v14  ;;  %v2014_v6 = vld [vmem:[%s2990_s15 + $0x1b4] sm:$0xf0]  ;;  %v1984_v14 = vld [vmem:[%s2990_s15 + $0x160] sm:$0xf] }
 0x1fc   :  { %v723_v10 = vpack.c.bf16 %v722_v9, %v721_v8  ;;  %v2140_v8 = vld [vmem:[%s2990_s15 + $0x15c] sm:$0xf]  ;;  %v1913_v9 = vor.u32 %v2128_v62, %v1912_v61  ;;  %1343 = vmatpush.bf16.msrb.mxu1 %v2009_v7  ;;  %v1805_v61 = vor.u32 %v2097_v53, %v1802_v54  ;;  %v1809_v62 = vor.u32 %v2101_v57, %v1808_v56  ;;  %v1866_v13 = vld [vmem:[%s2990_s15 + $0x94] sm:$0xf0]  ;;  %v1908_v53 = vld [vmem:[%s2990_s15 + $0xc0] sm:$0xf] }
 0x1fd   :  { %v2013_v7 = vor.u32 %v2151_v4, %v2012_v2  ;;  %v2124_v54 = vld [vmem:[%s2990_s15 + $0xd8] sm:$0xf0]  ;;  %v1872_v57 = vld [vmem:[%s2990_s15 + $0x80] sm:$0xf]  ;;  %v1844_v2 = vld [vmem:[%s2990_s15 + $0x48] sm:$0xf] }
 0x1fe   :  { %1743 = vmatmul.msk.bf16.vlgmr.msra.gmra.mxu0 %vm735_vm3, %v723_v10  ;;  %v1884_v10 = vld [vmem:[%s2990_s15 + $0xa8] sm:$0xf]  ;;  %v1909_v56 = vor.u32 %v2124_v54, %v1908_v53  ;;  %v2106_v4 = vld [vmem:[%s2990_s15 + $0x4c] sm:$0xf] }
 0x1ff   :  { %1304 = vmatpush.bf16.msrb.mxu0 %v1913_v9  ;;  %v2020_v9 = vld [vmem:[%s2990_s15 + $0x1a0] sm:$0xf] }
 0x27b   :  { %v752_v19 = vpop.f32.mrf.mxu0 }
 0x27c   :  { %v753_v20 = vadd.f32 %v2159_v18, %v752_v19  ;;  %v2122_v19 = vld [vmem:[%s2990_s15 + $0xc8] sm:$0xf0] }
 0x27e   :  { %1455 = vst [vmem:[%s2992_s17] sm:$0xff] %v753_v20 }
 0x283   :  { %v754_v21 = vpop.f32.mrf.mxu0 }
 0x284   :  { %v755_v22 = vadd.f32 %v2159_v18, %v754_v21  ;;  %v1981_v18 = vor.u32 %v2140_v8, %v1978_v12  ;;  %v1950_v21 = vld [vmem:[%s2990_s15 + $0x13c] sm:$0xf0]  ;;  %v2017_v8 = vor.u32 %v2148_v5, %v2014_v6  ;;  %v2112_v12 = vld [vmem:[%s2990_s15 + $0x7c] sm:$0xf]  ;;  %v1846_v5 = vld [vmem:[%s2990_s15 + $0x64] sm:$0xf0] }
 0x285   :  { %v1852_v6 = vld [vmem:[%s2990_s15 + $0x50] sm:$0xf] }
 0x286   :  { %v757_v23 = vpack.c.bf16 %v755_v22, %v753_v20  ;;  %1456 = vst [vmem:[%s2992_s17 + $0x8] sm:$0xff] %v755_v22  ;;  %v2133_v20 = vld [vmem:[%s2990_s15 + $0x124] sm:$0xf]  ;;  %v1885_v22 = vor.u32 %v2121_v11, %v1884_v10  ;;  %1344 = vmatpush.bf16.msrb.mxu1 %v1981_v18  ;;  %v2152_v10 = vld [vmem:[%s2990_s15 + $0x1b8] sm:$0xf0] }
 0x287   :  { %v2021_v11 = vor.u32 %v2152_v10, %v2020_v9  ;;  %v1986_v18 = vld [vmem:[%s2990_s15 + $0x17c] sm:$0xf0]  ;;  %v1849_v9 = vor.u32 %v2106_v4, %v1846_v5 }
 0x288   :  { %834 = vmatmul.bf16.vlgmr.msra.gmra.mxu1 %v757_v23  ;;  %v1856_v23 = vld [vmem:[%s2990_s15 + $0x70] sm:$0xf]  ;;  %1305 = vmatpush.bf16.msrb.mxu0 %v1885_v22  ;;  %v2145_v22 = vld [vmem:[%s2990_s15 + $0x180] sm:$0xf0] }
 0x289   :  { %v1857_v36 = vor.u32 %v2114_v24, %v1856_v23  ;;  %v2105_v24 = vld [vmem:[%s2990_s15 + $0x44] sm:$0xf] }
 0x28c   :  { %1306 = vmatpush.bf16.msrb.mxu0 %v1857_v36  ;;  %v2098_v36 = vld [vmem:[%s2990_s15 + $0xc] sm:$0xf] }
 0x290   :  { %1307 = vmatpush.bf16.msrb.mxu0 %v1829_v46  ;;  %v2131_v46 = vld [vmem:[%s2990_s15 + $0x110] sm:$0xf0] }
 0x294   :  { %1308 = vmatpush.bf16.msrb.mxu0 %v1801_v58  ;;  %v2116_v58 = vld [vmem:[%s2990_s15 + $0x98] sm:$0xf0] }
 0x298   :  { %1357 = vmatpush.bf16.msra.mxu0 %v2013_v7  ;;  %v2110_v7 = vld [vmem:[%s2990_s15 + $0x68] sm:$0xf0] }
 0x299   :  { %v1853_v10 = vor.u32 %v2110_v7, %v1852_v6 }
 0x305   :  { %v835_v25 = vpop.f32.mrf.mxu1 }
 0x306   :  { %v836_v27 = vadd.f32 %v2160_v26, %v835_v25  ;;  %v1953_v25 = vor.u32 %v2133_v20, %v1950_v21  ;;  %v1992_v21 = vld [vmem:[%s2990_s15 + $0x168] sm:$0xf] }
 0x307   :  { %v1993_v23 = vor.u32 %v2145_v22, %v1992_v21  ;;  %v2162_v21 = vld [vmem:[%s2989_s14] ss:$0 sm:$0xff]  ;;  %s2217_s14 = smov [#allocation2]  }
 0x308   :  { %v840_v30 = vmax.f32 %v836_v27, 0.0  ;;  %v1893_v27 = vor.u32 %v2122_v19, %v1892_v17  ;;  %1345 = vmatpush.bf16.msrb.mxu1 %v1953_v25  ;;  %v2141_v17 = vld [vmem:[%s2990_s15 + $0x164] sm:$0xf]  ;;  %v1838_v25 = vld [vmem:[%s2990_s15 + $0x5c] sm:$0xf0] }
 0x309   :  { %v1989_v20 = vor.u32 %v2141_v17, %v1986_v18 }
 0x30a   :  { %1333 = vmatpush.bf16.msrb.mxu3 %v1893_v27  ;;  %v1841_v27 = vor.u32 %v2105_v24, %v1838_v25 }
 0x30d   :  { %v837_v28 = vpop.f32.mrf.mxu1 }
 0x30e   :  { %v838_v29 = vadd.f32 %v2160_v26, %v837_v28  ;;  %v1889_v26 = vor.u32 %v2118_v15, %v1886_v16  ;;  %v2111_v28 = vld [vmem:[%s2990_s15 + $0x74] sm:$0xf]  ;;  %1334 = vmatpush.bf16.msrb.mxu3 %v1865_v39  ;;  %v1869_v15 = vor.u32 %v2112_v12, %v1866_v13  ;;  %v2144_v16 = vld [vmem:[%s2990_s15 + $0x178] sm:$0xf0]  ;;  %v2102_v12 = vld [vmem:[%s2990_s15 + $0x28] sm:$0xf0] }
 0x30f   :  { %v1985_v19 = vor.u32 %v2144_v16, %v1984_v14  ;;  %v2099_v13 = vld [vmem:[%s2990_s15 + $0x14] sm:$0xf]  ;;  %v1818_v14 = vld [vmem:[%s2990_s15 + $0x2c] sm:$0xf0] }
 0x310   :  { %v841_v31 = vmax.f32 %v838_v29, 0.0  ;;  %v2126_v29 = vld [vmem:[%s2990_s15 + $0xec] sm:$0xf]  ;;  %1319 = vmatpush.bf16.msra.mxu2 %v1889_v26  ;;  %v1956_v26 = vld [vmem:[%s2990_s15 + $0x128] sm:$0xf]  ;;  %v1821_v18 = vor.u32 %v2099_v13, %v1818_v14 }
 0x311   :  { %1358 = vmatpush.bf16.msra.mxu0 %v1985_v19  ;;  %v2103_v16 = vld [vmem:[%s2990_s15 + $0x30] sm:$0xf0] }
 0x312   :  { %v842_v32 = vpack.c.bf16 %v841_v31, %v840_v30  ;;  %v1922_v30 = vld [vmem:[%s2990_s15 + $0x104] sm:$0xf0]  ;;  %1335 = vmatpush.bf16.msrb.mxu3 %v1837_v49  ;;  %v2123_v49 = vld [vmem:[%s2990_s15 + $0xd0] sm:$0xf0] }
 0x313   :  { %v1925_v37 = vor.u32 %v2126_v29, %v1922_v30  ;;  %v2134_v29 = vld [vmem:[%s2990_s15 + $0x12c] sm:$0xf]  ;;  %v1958_v30 = vld [vmem:[%s2990_s15 + $0x144] sm:$0xf0] }
 0x314   :  { %1780 = vmatmul.msk.bf16.vlgmr.msrb.gmra.mxu2 %vm735_vm3, %v842_v32  ;;  %v1858_v32 = vld [vmem:[%s2990_s15 + $0x8c] sm:$0xf0] }
 0x315   :  { %v1861_v38 = vor.u32 %v2111_v28, %v1858_v32  ;;  %1346 = vmatpush.bf16.msrb.mxu1 %v1925_v37  ;;  %v2137_v28 = vld [vmem:[%s2990_s15 + $0x140] sm:$0xf0]  ;;  %v1961_v32 = vor.u32 %v2134_v29, %v1958_v30  ;;  %v1810_v37 = vld [vmem:[%s2990_s15 + $0x24] sm:$0xf0] }
 0x316   :  { %1336 = vmatpush.bf16.msrb.mxu3 %v1809_v62  ;;  %v1813_v39 = vor.u32 %v2098_v36, %v1810_v37  ;;  %v1880_v62 = vld [vmem:[%s2990_s15 + $0x88] sm:$0xf] }
 0x317   :  { %1320 = vmatpush.bf16.msra.mxu2 %v1861_v38  ;;  %v1928_v38 = vld [vmem:[%s2990_s15 + $0xf0] sm:$0xf] }
 0x318   :  { %v1929_v43 = vor.u32 %v2130_v40, %v1928_v38 }
 0x319   :  { %1347 = vmatpush.bf16.msrb.mxu1 %v1897_v3  ;;  %v2109_v3 = vld [vmem:[%s2990_s15 + $0x60] sm:$0xf0] }
 0x31b   :  { %1321 = vmatpush.bf16.msra.mxu2 %v1833_v48  ;;  %v1900_v48 = vld [vmem:[%s2990_s15 + $0xb8] sm:$0xf] }
 0x31c   :  { %v1901_v51 = vor.u32 %v2123_v49, %v1900_v48 }
 0x31d   :  { %1348 = vmatpush.bf16.msrb.mxu1 %v1869_v15  ;;  %v1824_v15 = vld [vmem:[%s2990_s15 + $0x18] sm:$0xf] }
 0x31e   :  { %v1825_v19 = vor.u32 %v2103_v16, %v1824_v15 }
 0x31f   :  { %1322 = vmatpush.bf16.msra.mxu2 %v1805_v61  ;;  %v1874_v61 = vld [vmem:[%s2990_s15 + $0x9c] sm:$0xf0] }
 0x321   :  { %1349 = vmatpush.bf16.msrb.mxu1 %v1841_v27 }
 0x323   :  { %1371 = vmatpush.bf16.msrb.mxu2 %v2017_v8  ;;  %v1845_v8 = vor.u32 %v2109_v3, %v1844_v2 }
 0x325   :  { %1350 = vmatpush.bf16.msrb.mxu1 %v1813_v39 }
 0x327   :  { %1372 = vmatpush.bf16.msrb.mxu2 %v1989_v20 }
 0x32b   :  { %1373 = vmatpush.bf16.msrb.mxu2 %v1961_v32 }
 0x32f   :  { %1374 = vmatpush.bf16.msrb.mxu2 %v1933_v44 }
 0x397   :  { %v869_v31 = vpop.f32.mrf.mxu2 }
 0x398   :  { %v870_v47 = vadd.f32 %v2161_v35, %v869_v31  ;;  %v1957_v31 = vor.u32 %v2137_v28, %v1956_v26  ;;  %v2961_v28 = vld [vmem:[%s2991_s16] sm:$0x7f]  ;;  %s1477_s16 = sshll.u32 %s2217_s14, 4  ;;  %s1478_s16 = int_to_ptr.vmem [resolvable:$true] %s1477_s16 }
 0x399   :  { %v999_v29 = vperm.slane %v2961_v28, 0  ;;  %v1002_v30 = vperm.slane %v2961_v28, 3  ;;  %v1000_v36 = vperm.slane %v2961_v28, 1  ;;  %v1001_v38 = vperm.slane %v2961_v28, 2 }
 0x39a   :  { %v874_v59 = vmax.f32 %v870_v47, 0.0  ;;  %1359 = vmatpush.bf16.msra.mxu0 %v1957_v31  ;;  %v1937_v47 = vor.u32 %v2131_v46, %v1936_v45 }
 0x39e   :  { %1360 = vmatpush.bf16.msra.mxu0 %v1929_v43 }
 0x39f   :  { %v871_v52 = vpop.f32.mrf.mxu2 }
 0x3a0   :  { %v872_v55 = vadd.f32 %v2161_v35, %v871_v52  ;;  %v1965_v35 = vor.u32 %v2138_v34, %v1964_v33  ;;  %v1902_v52 = vld [vmem:[%s2990_s15 + $0xd4] sm:$0xf0] }
 0x3a2   :  { %v875_v60 = vmax.f32 %v872_v55, 0.0  ;;  %v1905_v55 = vor.u32 %v2120_v50, %v1902_v52  ;;  %1361 = vmatpush.bf16.msra.mxu0 %v1901_v51 }
 0x3a4   :  { %v876_v63 = vpack.c.bf16 %v875_v60, %v874_v59  ;;  %v2113_v59 = vld [vmem:[%s2990_s15 + $0x84] sm:$0xf]  ;;  %v1873_v60 = vor.u32 %v2116_v58, %v1872_v57  ;;  %1375 = vmatpush.bf16.msrb.mxu2 %v1905_v55  ;;  %v1003_v55 = vperm.slane %v2961_v28, 4 }
 0x3a5   :  { %v1877_v0 = vor.u32 %v2113_v59, %v1874_v61 }
 0x3a6   :  { %1797 = vmatmul.msk.bf16.vlgmr.msra.gmra.mxu3 %vm703_vm2, %v876_v63  ;;  %v2117_v63 = vld [vmem:[%s2990_s15 + $0xa0] sm:$0xf0]  ;;  %1362 = vmatpush.bf16.msra.mxu0 %v1873_v60 }
 0x3a7   :  { %1385 = vmatpush.bf16.msra.mxu3 %v2021_v11  ;;  %v1881_v1 = vor.u32 %v2117_v63, %v1880_v62  ;;  %v1816_v11 = vld [vmem:[%s2990_s15 + $0x10] sm:$0xf] }
 0x3a8   :  { %1376 = vmatpush.bf16.msrb.mxu2 %v1877_v0  ;;  %v1817_v17 = vor.u32 %v2102_v12, %v1816_v11  ;;  %v1005_v12 = vperm.slane %v2961_v28, 6 }
 0x3aa   :  { %1363 = vmatpush.bf16.msra.mxu0 %v1845_v8  ;;  %v1004_v8 = vperm.slane %v2961_v28, 5 }
 0x3ab   :  { %1386 = vmatpush.bf16.msra.mxu3 %v1993_v23 }
 0x3ac   :  { %1377 = vmatpush.bf16.msrb.mxu2 %v1849_v9 }
 0x3ae   :  { %1364 = vmatpush.bf16.msra.mxu0 %v1817_v17 }
 0x3af   :  { %1387 = vmatpush.bf16.msra.mxu3 %v1965_v35 }
 0x3b0   :  { %1378 = vmatpush.bf16.msrb.mxu2 %v1821_v18 }
 0x3b3   :  { %1388 = vmatpush.bf16.msra.mxu3 %v1937_v47 }
 0x3b7   :  { %1389 = vmatpush.bf16.msra.mxu3 %v1909_v56 }
 0x3bb   :  { %1390 = vmatpush.bf16.msra.mxu3 %v1881_v1 }
 0x3bf   :  { %1391 = vmatpush.bf16.msra.mxu3 %v1853_v10 }
 0x3c3   :  { %1392 = vmatpush.bf16.msra.mxu3 %v1825_v19 }
 0x429   :  { %v925_v20 = vpop.f32.mrf.mxu3 }
 0x42a   :  { %v926_v22 = vadd.f32 %v2162_v21, %v925_v20 }
 0x42c   :  { %v930_v25 = vmax.f32 %v926_v22, 0.0 }
 0x431   :  { %v927_v23 = vpop.f32.mrf.mxu3 }
 0x432   :  { %v928_v24 = vadd.f32 %v2162_v21, %v927_v23 }
 0x434   :  { %v931_v26 = vmax.f32 %v928_v24, 0.0 }
 0x436   :  { %v932_v27 = vpack.c.bf16 %v931_v26, %v930_v25 }
 0x438   :  { %1309 = vmatmul.bf16.vlgmr.msrb.gmra.mxu0 %v932_v27  ;;  %1323 = vmatmul.bf16.vlgmr.msra.gmra.mxu2 %v932_v27 }
 0x439   :  { %1337 = vmatmul.bf16.vlgmr.msrb.gmra.mxu3 %v932_v27  ;;  %1351 = vmatmul.bf16.vlgmr.msrb.gmra.mxu1 %v932_v27 }
 0x448   :  { %1365 = vmatmul.bf16.vlgmr.msra.gmra.mxu0 %v932_v27  ;;  %1379 = vmatmul.bf16.vlgmr.msrb.gmra.mxu2 %v932_v27 }
 0x449   :  { %1393 = vmatmul.bf16.vlgmr.msra.gmra.mxu3 %v932_v27 }
 0x4b5   :  { %v1310_v31 = vpop.f32.mrf.mxu0 }
 0x4b6   :  { %v1311_v32 = vadd.f32 %v1310_v31, %v999_v29  ;;  %v1352_v33 = vpop.f32.mrf.mxu1 }
 0x4b7   :  { %v1353_v34 = vadd.f32 %v1352_v33, %v1002_v30 }
 0x4b8   :  { %v1399_v35 = vmul.f32 0.5, %v1311_v32 }
 0x4b9   :  { %v1402_v37 = vmul.f32 0.5, %v1353_v34 }
 0x4ba   :  { %2163 = vtanh.f32 %v1399_v35 }
 0x4bb   :  { %2165 = vtanh.f32 %v1402_v37  ;;  %v1324_v39 = vpop.f32.mrf.mxu2 }
 0x4bc   :  { %v1325_v40 = vadd.f32 %v1324_v39, %v1000_v36  ;;  %v1338_v41 = vpop.f32.mrf.mxu3 }
 0x4bd   :  { %v1339_v42 = vadd.f32 %v1338_v41, %v1001_v38  ;;  %v1312_v43 = vpop.f32.mrf.mxu0 }
 0x4be   :  { %v1400_v44 = vmul.f32 0.5, %v1325_v40  ;;  %v1313_v45 = vadd.f32 %v1312_v43, %v999_v29  ;;  %v1354_v46 = vpop.f32.mrf.mxu1 }
 0x4bf   :  { %v1401_v47 = vmul.f32 0.5, %v1339_v42  ;;  %v1355_v48 = vadd.f32 %v1354_v46, %v1002_v30 }
 0x4c0   :  { %v2164_v49 = vpop.eup %2163  ;;  %2167 = vtanh.f32 %v1400_v44  ;;  %v1406_v50 = vmul.f32 0.5, %v1313_v45 }
 0x4c1   :  { %v2166_v51 = vpop.eup %2165  ;;  %v1427_v52 = vmul.f32 0.5, %v2164_v49  ;;  %2169 = vtanh.f32 %v1401_v47  ;;  %v1409_v53 = vmul.f32 0.5, %v1355_v48 }
 0x4c2   :  { %v1430_v54 = vmul.f32 0.5, %v2166_v51  ;;  %2171 = vtanh.f32 %v1406_v50 }
 0x4c3   :  { %v1441_v56 = vadd.f32 0.5, %v1427_v52  ;;  %2173 = vtanh.f32 %v1409_v53  ;;  %v1326_v57 = vpop.f32.mrf.mxu2 }
 0x4c4   :  { %v1444_v58 = vadd.f32 0.5, %v1430_v54  ;;  %v1327_v59 = vadd.f32 %v1326_v57, %v1000_v36  ;;  %v1340_v60 = vpop.f32.mrf.mxu3 }
 0x4c5   :  { %1457 = vst [vmem:[#allocation2] sm:$0xff] %v1441_v56  ;;  %v1341_v61 = vadd.f32 %v1340_v60, %v1001_v38  ;;  %v1366_v62 = vpop.f32.mrf.mxu0 }
 0x4c6   :  { %v2168_v63 = vpop.eup %2167  ;;  %1460 = vst [vmem:[#allocation2 + $0x18] sm:$0xff] %v1444_v58  ;;  %v1407_v0 = vmul.f32 0.5, %v1327_v59  ;;  %v1367_v1 = vadd.f32 %v1366_v62, %v1003_v55 }
 0x4c7   :  { %v2170_v2 = vpop.eup %2169  ;;  %v1428_v3 = vmul.f32 0.5, %v2168_v63  ;;  %v1408_v4 = vmul.f32 0.5, %v1341_v61 }
 0x4c8   :  { %v2172_v5 = vpop.eup %2171  ;;  %v1429_v6 = vmul.f32 0.5, %v2170_v2  ;;  %2175 = vtanh.f32 %v1407_v0  ;;  %v1403_v7 = vmul.f32 0.5, %v1367_v1 }
 0x4c9   :  { %v2174_v9 = vpop.eup %2173  ;;  %v1442_v10 = vadd.f32 0.5, %v1428_v3  ;;  %v1434_v11 = vmul.f32 0.5, %v2172_v5  ;;  %2177 = vtanh.f32 %v1408_v4 }
 0x4ca   :  { %v1443_v13 = vadd.f32 0.5, %v1429_v6  ;;  %v1437_v14 = vmul.f32 0.5, %v2174_v9  ;;  %2179 = vtanh.f32 %v1403_v7 }
 0x4cb   :  { %1458 = vst [vmem:[#allocation2 + $0x8] sm:$0xff] %v1442_v10  ;;  %v1448_v15 = vadd.f32 0.5, %v1434_v11  ;;  %v1380_v16 = vpop.f32.mrf.mxu2 }
 0x4cc   :  { %1459 = vst [vmem:[#allocation2 + $0x10] sm:$0xff] %v1443_v13  ;;  %v1451_v17 = vadd.f32 0.5, %v1437_v14  ;;  %v1381_v18 = vadd.f32 %v1380_v16, %v1004_v8  ;;  %v1394_v19 = vpop.f32.mrf.mxu3 }
 0x4cd   :  { %1464 = vst [vmem:[#allocation2 + $0x38] sm:$0xff] %v1448_v15  ;;  %v1395_v20 = vadd.f32 %v1394_v19, %v1005_v12  ;;  %v1368_v21 = vpop.f32.mrf.mxu0 }
 0x4ce   :  { %v2176_v22 = vpop.eup %2175  ;;  %1467 = vst [vmem:[#allocation2 + $0x50] sm:$0xff] %v1451_v17  ;;  %v1404_v23 = vmul.f32 0.5, %v1381_v18  ;;  %v1369_v24 = vadd.f32 %v1368_v21, %v1003_v55 }
 0x4cf   :  { %v2178_v25 = vpop.eup %2177  ;;  %v1435_v26 = vmul.f32 0.5, %v2176_v22  ;;  %v1405_v27 = vmul.f32 0.5, %v1395_v20 }
 0x4d0   :  { %v2180_v28 = vpop.eup %2179  ;;  %v1436_v29 = vmul.f32 0.5, %v2178_v25  ;;  %2181 = vtanh.f32 %v1404_v23  ;;  %v1410_v30 = vmul.f32 0.5, %v1369_v24 }
 0x4d1   :  { %v1449_v31 = vadd.f32 0.5, %v1435_v26  ;;  %v1431_v32 = vmul.f32 0.5, %v2180_v28  ;;  %2183 = vtanh.f32 %v1405_v27 }
 0x4d2   :  { %v1450_v33 = vadd.f32 0.5, %v1436_v29  ;;  %2185 = vtanh.f32 %v1410_v30 }
 0x4d3   :  { %1465 = vst [vmem:[#allocation2 + $0x40] sm:$0xff] %v1449_v31  ;;  %v1445_v34 = vadd.f32 0.5, %v1431_v32  ;;  %v1382_v35 = vpop.f32.mrf.mxu2 }
 0x4d4   :  { %1466 = vst [vmem:[#allocation2 + $0x48] sm:$0xff] %v1450_v33  ;;  %v1383_v36 = vadd.f32 %v1382_v35, %v1004_v8  ;;  %v1396_v37 = vpop.f32.mrf.mxu3 }
 0x4d5   :  { %1461 = vst [vmem:[#allocation2 + $0x20] sm:$0xff] %v1445_v34  ;;  %v1397_v38 = vadd.f32 %v1396_v37, %v1005_v12 }
 0x4d6   :  { %v2182_v39 = vpop.eup %2181  ;;  %v1411_v40 = vmul.f32 0.5, %v1383_v36 }
 0x4d7   :  { %v2184_v41 = vpop.eup %2183  ;;  %v1432_v42 = vmul.f32 0.5, %v2182_v39  ;;  %v1412_v43 = vmul.f32 0.5, %v1397_v38 }
 0x4d8   :  { %v2186_v44 = vpop.eup %2185  ;;  %v1433_v45 = vmul.f32 0.5, %v2184_v41  ;;  %2187 = vtanh.f32 %v1411_v40 }
 0x4d9   :  { %v1446_v46 = vadd.f32 0.5, %v1432_v42  ;;  %v1438_v47 = vmul.f32 0.5, %v2186_v44  ;;  %2189 = vtanh.f32 %v1412_v43 }
 0x4da   :  { %v1447_v48 = vadd.f32 0.5, %v1433_v45 }
 0x4db   :  { %1462 = vst [vmem:[#allocation2 + $0x28] sm:$0xff] %v1446_v46  ;;  %v1452_v49 = vadd.f32 0.5, %v1438_v47 }
 0x4dc   :  { %1463 = vst.msk [vmem:[#allocation2 + $0x30] sm:$0xff] %vm477_vm0, %v1447_v48 }
 0x4dd   :  { %1468 = vst [vmem:[#allocation2 + $0x58] sm:$0xff] %v1452_v49 }
 0x4de   :  { %v2188_v50 = vpop.eup %2187 }
 0x4df   :  { %v2190_v51 = vpop.eup %2189  ;;  %v1439_v52 = vmul.f32 0.5, %v2188_v50 }
 0x4e0   :  { %v1440_v53 = vmul.f32 0.5, %v2190_v51 }
 0x4e1   :  { %v1453_v54 = vadd.f32 0.5, %v1439_v52 }
 0x4e2   :  { %v1454_v55 = vadd.f32 0.5, %v1440_v53 }
 0x4e3   :  { %1469 = vst [vmem:[#allocation2 + $0x60] sm:$0xff] %v1453_v54 }
 0x4e4   :  { %1470 = vst.msk [vmem:[#allocation2 + $0x68] sm:$0xff] %vm477_vm0, %v1454_v55 }
 0x4e5   :  { %1485 = dma.vmem_to_hbm [thread:$0]  %s1478_s16, 1792, %s1480_s12, [#allocation3], %s2218_s8, %s2218_s8, %s2219_s20  }
 0x4e6   :  { %2215 = dma.done.wait [#allocation3], 1792  }
 0x4e7   :  { %2216 = vsyncadd [#allocation3], 4294965504 }
 0x4e8   :  { %1492 = vsyncpa [#allocation3], 1 }

</bundles_post_ra>
